<compile_context>
chip_gen: v6e
topology: v6e:2x2x1
jax: 0.10.0
libtpu: 0.0.40
codegen_flags: <defaults>
</compile_context>

<pallas_src>
import math
from functools import partial

import jax
import jax.numpy as jnp
import numpy as np
from jax import lax
from jax.experimental import pallas as pl
from jax.experimental.pallas import tpu as pltpu

NEG_INF = -1e30  # large finite negative (avoids exp(-inf - -inf) NaNs)


def _pick_tile(dim, cap):
    """Largest tile <= cap that evenly divides dim (falls back to dim)."""
    if dim <= cap:
        return dim
    t = cap
    while t > 1 and dim % t:
        t //= 2
    return t if (t >= 8 and dim % t == 0) else dim


# ----------------------------------------------------------------------------
# Kernel 1: tiled linear projection  y = x @ W_t   (W_t already (K, N), bf16)
# ----------------------------------------------------------------------------
def _linear_kernel(x_ref, w_ref, o_ref, acc_ref):
    @pl.when(pl.program_id(2) == 0)
    def _():
        acc_ref[...] = jnp.zeros_like(acc_ref)

    # bf16 operands, f32 accumulation on the MXU.
    acc_ref[...] += jnp.dot(x_ref[...], w_ref[...],
                            preferred_element_type=jnp.float32)

    @pl.when(pl.program_id(2) == pl.num_programs(2) - 1)
    def _():
        o_ref[...] = acc_ref[...].astype(o_ref.dtype)


def linear(x2d, w_t, *, out_dtype=None, tm_cap=256, tn_cap=256, tk_cap=512):
    """y = x2d @ w_t with w_t of shape (K, N); tiled, pipelined, bf16 MXU / f32 acc."""
    M, K = x2d.shape
    K2, N = w_t.shape
    assert K == K2
    out_dtype = out_dtype or x2d.dtype
    tm, tn, tk = _pick_tile(M, tm_cap), _pick_tile(N, tn_cap), _pick_tile(K, tk_cap)
    return pl.pallas_call(
        _linear_kernel,
        out_shape=jax.ShapeDtypeStruct((M, N), out_dtype),
        grid=(M // tm, N // tn, K // tk),
        in_specs=[pl.BlockSpec((tm, tk), lambda i, j, k: (i, k)),
                  pl.BlockSpec((tk, tn), lambda i, j, k: (k, j))],
        out_specs=pl.BlockSpec((tm, tn), lambda i, j, k: (i, j)),
        scratch_shapes=[pltpu.VMEM((tm, tn), jnp.float32)],
        compiler_params=pltpu.CompilerParams(
            dimension_semantics=("parallel", "parallel", "arbitrary")),
    )(x2d, w_t)


# ----------------------------------------------------------------------------
# Kernel 2: RoPE on the flat (B*S*H, Dh) view of the projections.
# Rows are (b, s, h)-major; per-row layout is de-interleaved [even half | odd half].
# cos_rep/sin_rep are (S*H, Dh/2): cos/sin rows replicated per head.
# ----------------------------------------------------------------------------
def _rope_kernel(x_ref, cos_ref, sin_ref, o_ref, *, half):
    x = x_ref[...].astype(jnp.float32)       # (ts, Dh)
    c = cos_ref[...]                          # (ts, Dh/2)
    s = sin_ref[...]
    xe = x[:, :half]
    xo = x[:, half:]
    # complex rotation: e' = e*c - o*s ; o' = e*s + o*c (kept in split layout)
    o_ref[...] = jnp.concatenate(
        [xe * c - xo * s, xe * s + xo * c], axis=-1).astype(o_ref.dtype)


def apply_rope_heads(x_rows, cos_rep, sin_rep, *, ts_cap=512):
    R, Dh = x_rows.shape
    SH = cos_rep.shape[0]
    half = Dh // 2
    ts = _pick_tile(SH, ts_cap)      # divides S*H, hence also R = B*S*H
    n_sh = SH // ts
    return pl.pallas_call(
        partial(_rope_kernel, half=half),
        out_shape=jax.ShapeDtypeStruct((R, Dh), x_rows.dtype),
        grid=(R // ts,),
        in_specs=[pl.BlockSpec((ts, Dh), lambda i: (i, 0)),
                  pl.BlockSpec((ts, half), lambda i: (i % n_sh, 0)),
                  pl.BlockSpec((ts, half), lambda i: (i % n_sh, 0))],
        out_specs=pl.BlockSpec((ts, Dh), lambda i: (i, 0)),
        compiler_params=pltpu.CompilerParams(
            dimension_semantics=("parallel",)),
    )(x_rows, cos_rep, sin_rep)


# ----------------------------------------------------------------------------
# Kernel 3: flash-style causal attention, 2 heads (128 lanes) per grid step,
# reading/writing the (B*S, n_heads*Dh) projection layout directly.
# ----------------------------------------------------------------------------
def _flash_attn_kernel(q_ref, k_ref, v_ref, o_ref, m_sc, l_sc, acc_sc,
                       *, tq, tk, dh):
    qi = pl.program_id(1)
    ki = pl.program_id(2)

    @pl.when(ki == 0)
    def _():
        m_sc[...] = jnp.full_like(m_sc, NEG_INF)
        l_sc[...] = jnp.zeros_like(l_sc)
        acc_sc[...] = jnp.zeros_like(acc_sc)

    q_start = qi * tq
    k_start = ki * tk

    def update(masked):
        for h in range(2):                                  # static unroll: 2 heads/step
            q = q_ref[:, h * dh:(h + 1) * dh]               # (tq, dh) bf16
            k = k_ref[:, h * dh:(h + 1) * dh]               # (tk, dh) bf16
            # scale already folded into wq; bf16 operands, f32 scores
            s = lax.dot_general(q, k, (((1,), (1,)), ((), ())),
                                preferred_element_type=jnp.float32)
            if masked:
                row = q_start + lax.broadcasted_iota(jnp.int32, (tq, tk), 0)
                col = k_start + lax.broadcasted_iota(jnp.int32, (tq, tk), 1)
                s = jnp.where(row >= col, s, NEG_INF)
            m_prev = m_sc[h]
            m_new = jnp.maximum(m_prev, jnp.max(s, axis=-1, keepdims=True))
            alpha = jnp.exp(m_prev - m_new)
            p = jnp.exp(s - m_new)
            l_sc[h] = alpha * l_sc[h] + jnp.sum(p, axis=-1, keepdims=True)
            acc_sc[h] = alpha * acc_sc[h] + jnp.dot(
                p.astype(v_ref.dtype), v_ref[:, h * dh:(h + 1) * dh],
                preferred_element_type=jnp.float32)
            m_sc[h] = m_new

    # diagonal-straddling k-tiles: masked path
    @pl.when((k_start <= q_start + tq - 1) & (k_start + tk - 1 > q_start))
    def _():
        update(True)

    # strictly-below-diagonal k-tiles: unmasked fast path (no iota/compare/select)
    @pl.when(k_start + tk - 1 <= q_start)
    def _():
        update(False)

    # k-tiles entirely above the diagonal fall through (no compute; DMA also elided
    # by the clamped kv index_map).

    @pl.when(ki == pl.num_programs(2) - 1)
    def _():
        # exact normalization (the approximate reciprocal was the main accuracy loss)
        o_ref[...] = jnp.concatenate(
            [(acc_sc[h] / l_sc[h]).astype(o_ref.dtype) for h in range(2)], axis=-1)


def flash_attention(xq, xk, xv, *, batch, seq, n_heads, head_dim,
                    tq_cap=256, tk_cap=512):
    """xq/xk/xv: (B*S, n_heads*head_dim); returns attention output in the same layout."""
    BS, D = xq.shape
    assert D == n_heads * head_dim
    assert n_heads % 2 == 0 and (2 * head_dim) % 128 == 0
    HP = n_heads // 2
    tq = _pick_tile(seq, tq_cap)
    tk = _pick_tile(seq, tk_cap)
    nq = seq // tq
    nk = seq // tk

    def q_idx(g, qi, ki):
        return ((g // HP) * nq + qi, g % HP)

    def kv_idx(g, qi, ki):
        # Clamp so above-diagonal steps repeat the previous block index -> DMA elided.
        kmax = (qi * tq + tq - 1) // tk
        return ((g // HP) * nk + jnp.minimum(ki, kmax), g % HP)

    def o_idx(g, qi, ki):
        return ((g // HP) * nq + qi, g % HP)

    kv_spec = pl.BlockSpec((tk, 2 * head_dim), kv_idx)
    return pl.pallas_call(
        partial(_flash_attn_kernel, tq=tq, tk=tk, dh=head_dim),
        out_shape=jax.ShapeDtypeStruct((BS, D), xq.dtype),
        grid=(batch * HP, nq, nk),
        in_specs=[pl.BlockSpec((tq, 2 * head_dim), q_idx), kv_spec, kv_spec],
        out_specs=pl.BlockSpec((tq, 2 * head_dim), o_idx),
        scratch_shapes=[pltpu.VMEM((2, tq, 1), jnp.float32),
                        pltpu.VMEM((2, tq, 1), jnp.float32),
                        pltpu.VMEM((2, tq, head_dim), jnp.float32)],
        compiler_params=pltpu.CompilerParams(
            dimension_semantics=("parallel", "parallel", "arbitrary")),
    )(xq, xk, xv)


# ----------------------------------------------------------------------------
# Full Attention.forward (start_pos=0 prefill)
# ----------------------------------------------------------------------------
def attention_forward(x, wq, wk, wv, wo, cos, sin, *, n_heads,
                      lin_caps=(256, 256, 512), attn_caps=(256, 512)):
    B, S, D = x.shape
    Dh = D // n_heads
    mxu_dtype = jnp.bfloat16

    # ---- weight prep (amortized once per model in practice) ----
    # De-interleave each head's output features to [even pair-comp | odd pair-comp] so
    # RoPE acts on contiguous lane halves; q.k is invariant under the shared permutation
    # and V / WO are untouched, so the result matches the PyTorch reference.
    perm = (jnp.arange(n_heads)[:, None] * Dh +
            jnp.concatenate([jnp.arange(0, Dh, 2), jnp.arange(1, Dh, 2)])[None, :]
            ).reshape(-1)
    scale = 1.0 / math.sqrt(Dh)
    wq_t = (wq[perm] * scale).T.astype(mxu_dtype)   # fold 1/sqrt(Dh) into wq
    wk_t = wk[perm].T.astype(mxu_dtype)
    wv_t = wv.T.astype(mxu_dtype)
    wo_t = wo.T.astype(mxu_dtype)

    # cos/sin replicated per head so RoPE runs on the flat (B*S*H, Dh) view
    cos_rep = jnp.repeat(cos.astype(jnp.float32), n_heads, axis=0)   # (S*H, Dh/2)
    sin_rep = jnp.repeat(sin.astype(jnp.float32), n_heads, axis=0)

    tm, tn, tk = lin_caps
    x2d = x.reshape(B * S, D).astype(mxu_dtype)

    xq = linear(x2d, wq_t, tm_cap=tm, tn_cap=tn, tk_cap=tk)   # (B*S, D) bf16
    xk = linear(x2d, wk_t, tm_cap=tm, tn_cap=tn, tk_cap=tk)
    xv = linear(x2d, wv_t, tm_cap=tm, tn_cap=tn, tk_cap=tk)

    # RoPE on the free (B*S*H, Dh) reshape of the projections — no head transpose.
    xq = apply_rope_heads(xq.reshape(B * S * n_heads, Dh), cos_rep, sin_rep
                          ).reshape(B * S, D)
    xk = apply_rope_heads(xk.reshape(B * S * n_heads, Dh), cos_rep, sin_rep
                          ).reshape(B * S, D)

    tq_cap, tk_cap = attn_caps
    attn = flash_attention(xq, xk, xv, batch=B, seq=S, n_heads=n_heads,
                           head_dim=Dh, tq_cap=tq_cap, tk_cap=tk_cap)   # (B*S, D)

    out = linear(attn, wo_t, out_dtype=x.dtype, tm_cap=tm, tn_cap=tn, tk_cap=tk)
    return out.reshape(B, S, D)


# ----------------------------------------------------------------------------
# Pure-JAX reference (mirrors the PyTorch code; HIGHEST precision f32 baseline)
# ----------------------------------------------------------------------------
def attention_reference(x, wq, wk, wv, wo, cos, sin, *, n_heads):
    with jax.default_matmul_precision("highest"):
        B, S, D = x.shape
        head_dim = D // n_heads
        xq = (x @ wq.T).reshape(B, S, n_heads, head_dim)
        xk = (x @ wk.T).reshape(B, S, n_heads, head_dim)
        xv = (x @ wv.T).reshape(B, S, n_heads, head_dim)

        freqs = (cos + 1j * sin)[None, :, None, :]        # (1, S, 1, Dh/2)

        def rope(t):
            tr = t.reshape(B, S, n_heads, head_dim // 2, 2)
            tc = tr[..., 0] + 1j * tr[..., 1]
            o = tc * freqs
            return jnp.stack([o.real, o.imag], axis=-1).reshape(B, S, n_heads, head_dim)

        xq, xk = rope(xq), rope(xk)
        q = xq.transpose(0, 2, 1, 3)
        k = xk.transpose(0, 2, 1, 3)
        v = xv.transpose(0, 2, 1, 3)
        mask = jnp.triu(jnp.full((S, S), float("-inf"), dtype=jnp.float32), k=1)
        scores = jnp.einsum("bhqd,bhkd->bhqk", q, k) / math.sqrt(head_dim) + mask
        p = jax.nn.softmax(scores.astype(jnp.float32), axis=-1).astype(q.dtype)
        out = jnp.einsum("bhqk,bhkd->bhqd", p, v)
        out = out.transpose(0, 2, 1, 3).reshape(B, S, D)
        return out @ wo.T


if __name__ == "__main__":
    # ModelArgs-consistent shapes (dim=512, n_heads=8), small seq/batch.
    dim, n_heads = 512, 8
    head_dim = dim // n_heads           # 64
    bsz, seqlen = 2, 128
    start_pos = 0

    key = jax.random.PRNGKey(0)
    kx, kq, kk, kv, ko = jax.random.split(key, 5)

    x = jax.random.normal(kx, (bsz, seqlen, dim), dtype=jnp.float32)
    wq = jax.random.normal(kq, (dim, dim), dtype=jnp.float32) * 0.05
    wk = jax.random.normal(kk, (dim, dim), dtype=jnp.float32) * 0.05
    wv = jax.random.normal(kv, (dim, dim), dtype=jnp.float32) * 0.05
    wo = jax.random.normal(ko, (dim, dim), dtype=jnp.float32) * 0.05

    # freqs_cis (precompute_freqs_cis) as cos/sin of shape (S, head_dim//2)
    inv_freq = 1.0 / (10000.0 ** (jnp.arange(0, head_dim, 2, dtype=jnp.float32) / head_dim))
    t = jnp.arange(start_pos, start_pos + seqlen, dtype=jnp.float32)
    angles = jnp.outer(t, inv_freq)
    cos, sin = jnp.cos(angles), jnp.sin(angles)

    # Small tile caps so the multi-tile grid / K-accumulation / online-softmax /
    # causal-skip / masked-vs-unmasked paths are all exercised at these small shapes.
    out = attention_forward(x, wq, wk, wv, wo, cos, sin, n_heads=n_heads,
                            lin_caps=(128, 128, 128), attn_caps=(64, 64))
    out = jax.block_until_ready(out)

    ref = attention_reference(x, wq, wk, wv, wo, cos, sin, n_heads=n_heads)
    # bf16 MXU operands (projections, QK^T, P.V, WO) vs a HIGHEST-precision f32
    # reference: bf16-appropriate tolerance.
    np.testing.assert_allclose(np.asarray(out), np.asarray(ref), rtol=5e-2, atol=5e-2)

    print("KERNEL_OK")
</pallas_src>

<mosaic_0001>
module attributes {stable_mosaic.version = 11 : i64} {
  func.func @_linear_kernel(%arg0: i32, %arg1: i32, %arg2: i32, %arg3: memref<128x128xbf16, #tpu.memory_space<vmem>>, %arg4: memref<128x128xbf16, #tpu.memory_space<vmem>>, %arg5: memref<128x128xbf16, #tpu.memory_space<vmem>>, %arg6: memref<128x128xf32, #tpu.memory_space<vmem>>) attributes {dimension_semantics = [#tpu.dimension_semantics<parallel>, #tpu.dimension_semantics<parallel>, #tpu.dimension_semantics<arbitrary>], iteration_bounds = array<i64: 2, 4, 4>, scalar_prefetch = 0 : i64, scratch_operands = 1 : i64, tpu.core_type = #tpu.core_type<tc>, window_params = [{transform_indices = @transform_0, window_bounds = array<i64: 128, 128>}, {transform_indices = @transform_1, window_bounds = array<i64: 128, 128>}, {transform_indices = @transform_2, window_bounds = array<i64: 128, 128>}]} {
    %c0_i32 = arith.constant 0 : i32
    %0 = arith.cmpi eq, %arg2, %c0_i32 : i32
    %1 = arith.extui %0 : i1 to i32
    %c0_i32_0 = arith.constant 0 : i32
    %2 = arith.cmpi ne, %1, %c0_i32_0 : i32
    scf.if %2 {
      %cst_9 = arith.constant 0.000000e+00 : f32
      %12 = vector.broadcast %cst_9 : f32 to vector<128x128xf32>
      %c0_10 = arith.constant 0 : index
      %c0_11 = arith.constant 0 : index
      %13 = vector.load %arg6[%c0_10, %c0_11] : memref<128x128xf32, #tpu.memory_space<vmem>>, vector<128x128xf32>
      tpu.vector_store %arg6[%c0_10, %c0_11], %12 {strides = array<i32>} : memref<128x128xf32, #tpu.memory_space<vmem>>, vector<128x128xf32>,
    } else {
    }
    %c0 = arith.constant 0 : index
    %c0_1 = arith.constant 0 : index
    %3 = vector.load %arg6[%c0, %c0_1] : memref<128x128xf32, #tpu.memory_space<vmem>>, vector<128x128xf32>
    %c0_2 = arith.constant 0 : index
    %c0_3 = arith.constant 0 : index
    %4 = vector.load %arg3[%c0_2, %c0_3] : memref<128x128xbf16, #tpu.memory_space<vmem>>, vector<128x128xbf16>
    %c0_4 = arith.constant 0 : index
    %c0_5 = arith.constant 0 : index
    %5 = vector.load %arg4[%c0_4, %c0_5] : memref<128x128xbf16, #tpu.memory_space<vmem>>, vector<128x128xbf16>
    %cst = arith.constant dense<0.000000e+00> : vector<128x128xf32>
    %6 = tpu.matmul %4, %5, %cst {dimension_numbers = #tpu.dot_dimension_numbers<[1], [0], [0], [1], [0, 0, 1, 1], [], []>} : vector<128x128xbf16>, vector<128x128xbf16>, vector<128x128xf32> -> vector<128x128xf32>
    %7 = arith.addf %3, %6 : vector<128x128xf32>
    %c0_6 = arith.constant 0 : index
    %c0_7 = arith.constant 0 : index
    %8 = vector.load %arg6[%c0_6, %c0_7] : memref<128x128xf32, #tpu.memory_space<vmem>>, vector<128x128xf32>
    tpu.vector_store %arg6[%c0_6, %c0_7], %7 {strides = array<i32>} : memref<128x128xf32, #tpu.memory_space<vmem>>, vector<128x128xf32>,
    %c3_i32 = arith.constant 3 : i32
    %9 = arith.cmpi eq, %arg2, %c3_i32 : i32
    %10 = arith.extui %9 : i1 to i32
    %c0_i32_8 = arith.constant 0 : i32
    %11 = arith.cmpi ne, %10, %c0_i32_8 : i32
    scf.if %11 {
      %c0_9 = arith.constant 0 : index
      %c0_10 = arith.constant 0 : index
      %12 = vector.load %arg6[%c0_9, %c0_10] : memref<128x128xf32, #tpu.memory_space<vmem>>, vector<128x128xf32>
      %13 = arith.truncf %12 : vector<128x128xf32> to vector<128x128xbf16>
      %c0_11 = arith.constant 0 : index
      %c0_12 = arith.constant 0 : index
      %14 = vector.load %arg5[%c0_11, %c0_12] : memref<128x128xbf16, #tpu.memory_space<vmem>>, vector<128x128xbf16>
      tpu.vector_store %arg5[%c0_11, %c0_12], %13 {strides = array<i32>} : memref<128x128xbf16, #tpu.memory_space<vmem>>, vector<128x128xbf16>,
    } else {
    }
    return
  }
  func.func @transform_0(%arg0: i32, %arg1: i32, %arg2: i32) -> (i32, i32) {
    %c0_i32 = arith.constant 0 : i32
    return %arg0, %arg2 : i32, i32
  }
  func.func @transform_1(%arg0: i32, %arg1: i32, %arg2: i32) -> (i32, i32) {
    %c0_i32 = arith.constant 0 : i32
    return %arg2, %arg1 : i32, i32
  }
  func.func @transform_2(%arg0: i32, %arg1: i32, %arg2: i32) -> (i32, i32) {
    %c0_i32 = arith.constant 0 : i32
    return %arg0, %arg1 : i32, i32
  }
}

</mosaic_0001>

<bundles_post_ra>
// kernel: tpu_custom_call.1
= control target key start
LH: loop header
LB: loop body
LE: loop exit
PB: predicated region body
PF: predicated region fallthrough
CT: control target
= control target key end

     0   :  { %s1729_s0 = inlined_call_operand.hbm [shape: bf16[256,512], index: 0, kind: input, shape index: {}]   ;;  %s1730_s1 = inlined_call_operand.hbm [shape: bf16[512,512], index: 1, kind: input, shape index: {}]   ;;  %s1731_s2 = inlined_call_operand.hbm [shape: bf16[256,512], index: 2, kind: output, shape index: {}]  }
   0x1   :  { %1743 = sst [smem:[#allocation20_spill]] %s1729_s0 }
   0x2   :  { %1744 = sst [smem:[#allocation21_spill]] %s1730_s1 }
   0x3   :  { %1745 = sst [smem:[#allocation22_spill]] %s1731_s2 }
   0x4   :  { %7 = vsyncpa [#allocation4], 0 }
   0x5   :  { %9 = vsyncpa [#allocation4 + $0x1], 0 }
   0x6   :  { %10 = vsyncpa [#allocation7], 0 }
   0x7   :  { %12 = vsyncpa [#allocation7 + $0x1], 0 }
   0x8   :  { %13 = vsyncpa [#allocation5], 0 }
   0x9   :  { %15 = vsyncpa [#allocation5 + $0x1], 0  ;;  %s1366_s9 = smov 0   ;;  %s1368_s10 = smov 0  }
   0xa   :  { %s1370_s11 = smov 0   ;;  %s1372_s12 = smov 0  }
   0xb   :  { %s1374_s13 = smov 0   ;;  %s1376_s14 = smov 0  }
   0xc   :  { %s1378_s15 = smov 0   ;;  %s1380_s16 = smov 0  }
   0xd   :  { %s1382_s17 = smov 0   ;;  %s1384_s18 = smov 0  }
   0xe   :  { %s1386_s19 = smov 0   ;;  %s1388_s20 = smov 0  }
   0xf   :  { %s1390_s21 = smov 0   ;;  %s1392_s22 = smov 0  }
  0x10   :  { %s1394_s23 = smov 0   ;;  %s1396_s24 = smov 0  }
  0x11 LB: > { %1746 = sst [smem:[#allocation12_spill]] %s1315_s18  ;;  %s33_s25 = sadd.s32 1, %s1327_s21  ;;  %s1339_s24 = sphi %s1396_s24, %s21_s24   ;;  %s1335_s23 = sphi %s1394_s23, %s1785_s23   ;;  %s1331_s22 = sphi %s1392_s22, %s1798_s22   ;;  %s1327_s21 = sphi %s1390_s21, %s1797_s21   ;;  %s1323_s20 = sphi %s1388_s20, %s1782_s20   ;;  %s1319_s19 = sphi %s1386_s19, %s1796_s19   ;;  %s1315_s18 = sphi %s1384_s18, %s1795_s18   ;;  %s1311_s17 = sphi %s1382_s17, %s1794_s17   ;;  %s1307_s16 = sphi %s1380_s16, %s1793_s16   ;;  %s1303_s15 = sphi %s1378_s15, %s1792_s15   ;;  %s1299_s14 = sphi %s1376_s14, %s1791_s14   ;;  %s1295_s13 = sphi %s1374_s13, %s1790_s13   ;;  %s1291_s12 = sphi %s1372_s12, %s1789_s12   ;;  %s1287_s11 = sphi %s1370_s11, %s1788_s11   ;;  %s1283_s10 = sphi %s1368_s10, %s1787_s10   ;;  %s1279_s9 = sphi %s1366_s9, %s1786_s9  }
  0x12   : > { %1747 = sst [smem:[#allocation13_spill]] %s1319_s19  ;;  %s1732_s26 = sadd.s32 4294967295, %s1339_s24  }
  0x13   : > { %1748 = sst [smem:[#allocation14_spill]] %s1323_s20  ;;  %p1446_p0 = scmp.ge.s32.totalorder %s33_s25, 4 }
  0x14   : > { %1749 = sst [smem:[#allocation15_spill]] %s1335_s23  ;;  %p56_p1 = scmp.ne.s32.totalorder %s1311_s17, %s1307_s16 }
  0x15   : > { %s1800_s25 = smov (%p1446_p0, %s33_s25), 0  ;;  %p1735_p2 = scmp.eq.s32.totalorder %s1339_s24, 0 }
  0x16   : > { %1751 = sst [smem:[#allocation16_spill]] %s1800_s25  ;;  %p62_p3 = scmp.ne.s32.totalorder %s1307_s16, %s1303_s15 }
  0x17   : > { %p1462_p4 = scmp.eq.s32.totalorder %s1732_s26, 0  ;;  %s1468_s3 = ssub.s32 %s1327_s21, %s1800_s25 }
  0x18   : > { %p58_p5 = por %p1735_p2, %p56_p1  ;;  %p966_p7 = scmp.lt.s32.totalorder %s1339_s24, 32 }
  0x19   : > { %p1474_p6 = por %p1462_p4, %p62_p3  ;;  %s142_s5 = sand.u32 1, %s1311_s17  }
  0x1a   : > { %s767_s6 = sshll.u32 %s142_s5, 6  ;;  %s819_s7 = sshll.u32 %s1335_s23, 6 }
  0x1b   : > { %s152_s8 = sadd.s32 %s1327_s21, %s819_s7  ;;  %s146_s15 = scalar_lea.vmem [#allocation3], %s767_s6 }
  0x1c   : > { %s155_s29 = sshll.u32 %s146_s15, 4  ;;  %s770_s28 = sshll.u32 %s152_s8, 6  ;;  %s156_s29 = int_to_ptr.vmem [resolvable:$true] %s155_s29 }
  0x1d   : > { %s1754_s0 = sld [smem:[#allocation20_spill]]  ;;  %p1487_p8 = pnand %p966_p7, %p58_p5 }
  0x1e   : > { %s143_s20 = scalar_lea.sflag [#allocation4], %s142_s5  ;;  %s1132_s18 = scalar_lea.vmem %s156_s29, 1024 }
  0x1f   : > { %p1121_p9 = pneg %p1487_p8  ;;  %p1133_p10 = scmp.ne.s32.totalorder %s156_s29, %s1132_s18 }
  0x20   : > { %s1341_s6 = smov [#allocation3]  }
  0x21   : > { %p1135_p11 = pnand %p1133_p10, %p1121_p9  ;;  %s1137_s7 = sshll.u32 %s1341_s6, 4  ;;  %s1138_s7 = int_to_ptr.vmem [resolvable:$false] %s1137_s7 }
  0x22   : > { %s1139_s8 = scalar_lea.vmem %s1138_s7, 2048  ;;  %p1140_p13 = scmp.lt.s32.totalorder %s156_s29, %s1138_s7 }
  0x23   : > { %s154_s25 = scalar_lea.hbm %s1754_s0, %s770_s28  ;;  %p1136_p12 = pneg %p1135_p11 }
  0x24   : > { %p1141_p1 = scmp.lt.s32.totalorder %s1139_s8, %s1132_s18 }
  0x26   : > { %p1142_p3 = por %p1141_p1, %p1140_p13 }
  0x28   : > { %p1143_p2 = pnand %p1142_p3, %p1136_p12 }
  0x2a   : > { %1146 = shalt.err (!%p1143_p2)
}
  0x2b   : > { %s1736_s2 = smov 256   ;;  %s1737_s18 = smov 64  }
  0x2c   : > { %s1738_s26 = smov 4   ;;  %p775_p2 = scmp.ge.s32.totalorder %s1339_s24, 1 }
  0x2d   : > { %958 = dma.hbm_to_vmem [thread:$0]  (!%p1487_p8), %s154_s25, 1024, %s156_s29, %s143_s20, %s1736_s2, %s1737_s18, %s1738_s26  }
  0x2e   : > { %p186_p5 = scmp.lt.s32.totalorder %s1339_s24, 33  ;;  %s1756_s28 = sadd.s32 4294967295, %s1339_s24  }
  0x2f   : > { %p1502_p9 = scmp.eq.s32.totalorder %s1756_s28, 31  ;;  %s764_s19 = sadd.s32 4294967294, %s1339_s24  }
  0x30   : > { %p1506_p10 = pnand %p775_p2, %p186_p5  ;;  %s36_s6 = sadd.s32 1, %s1331_s22 }
  0x31   : > { %s1802_s6 = smov (!%p1446_p0, %s36_s6), %s1331_s22  ;;  %s77_s20 = sadd.s32 1, %s1299_s14 }
  0x32   : > { %p90_p8 = scmp.ne.s32.totalorder %s1295_s13, %s1291_s12  ;;  %p38_p11 = scmp.ge.s32.totalorder %s1802_s6, 4 }
  0x33   : > { %p84_p12 = scmp.ne.s32.totalorder %s1299_s14, %s1295_s13  ;;  %s105_s29 = sadd.s32 1, %s1287_s11 }
  0x34   : > { %p1522_p13 = por %p90_p8, %p1462_p4  ;;  %s1804_s6 = smov (%p38_p11, %s1802_s6), 0 }
  0x35   : > { %1760 = sst [smem:[#allocation17_spill]] %s1804_s6  ;;  %s1761_s7 = sadd.s32 1, %s1335_s23 }
  0x36   : > { %s1806_s7 = smov (!%p38_p11, %s1761_s7), %s1335_s23  ;;  %s73_s27 = ssub.s32 %s1331_s22, %s1804_s6 }
  0x37   : > { %p115_p0 = scmp.ne.s32.totalorder %s1287_s11, %s1283_s10  ;;  %p42_p1 = scmp.ge.s32.totalorder %s1806_s7, 2 }
  0x38   : > { %s74_s12 = sor.u32 %s73_s27, %s1468_s3  ;;  %p121_p2 = scmp.ne.s32.totalorder %s1283_s10, %s1279_s9 }
  0x39   : > { %p75_p4 = scmp.eq.s32.totalorder %s74_s12, 0  ;;  %p1539_p3 = por %p1502_p9, %p115_p0 }
  0x3a   : > { %s1808_s7 = smov (%p42_p1, %s1806_s7), 0  ;;  %p122_p11 = scmp.eq.s32.totalorder %s764_s19, 31 }
  0x3b   : > { %s1762_s30 = scalar_select %p1539_p3, 1, 0 }
  0x3c   : > { %1763 = sst [smem:[#allocation18_spill]] %s1808_s7  ;;  %s44_s28 = ssub.s32 %s1335_s23, %s1808_s7 }
  0x3d   : > { %s1546_s8 = scalar_select %p75_p4, %s1299_s14, %s77_s20  }
  0x3e   : > { %s46_s2 = sor.u32 %s1468_s3, %s44_s28  ;;  %s102_s18 = sor.u32 %s73_s27, %s44_s28 }
  0x3f   : > { %p47_p5 = scmp.eq.s32.totalorder %s46_s2, 0  ;;  %p103_p8 = scmp.eq.s32.totalorder %s102_s18, 0 }
  0x40   : > { %s165_s5 = sand.u32 1, %s1299_s14   ;;  %s1764_s12 = sadd.s32 1, %s1311_s17 }
  0x41   : > { %s1557_s26 = scalar_select %p47_p5, %s1311_s17, %s1764_s12  }
  0x42   : > { %s1560_s0 = scalar_select %p103_p8, %s1287_s11, %s105_s29  }
  0x43   : > { %1765 = sst [smem:[#allocation19_spill]] %s1557_s26  ;;  %p1766_p9 = scmp.eq.s32.totalorder %s1339_s24, 0 }
  0x44   : > { %p1567_p1 = por %p122_p11, %p121_p2  ;;  %s771_s7 = sshll.u32 %s165_s5, 6 }
  0x45   : > { %p86_p0 = por %p84_p12, %p1766_p9  ;;  %s820_s3 = sshll.u32 %s1327_s21, 6 }
  0x46   : > { %s1767_s20 = scalar_select %p1567_p1, 1, 0 }
  0x47   : > { %s175_s27 = sadd.s32 %s1331_s22, %s820_s3  ;;  %s169_s28 = scalar_lea.vmem [#allocation6], %s771_s7 }
  0x48   : > { %s774_s2 = sshll.u32 %s175_s27, 6  ;;  %s178_s18 = sshll.u32 %s169_s28, 4  ;;  %s179_s18 = int_to_ptr.vmem [resolvable:$true] %s178_s18 }
  0x49   : > { %s1768_s1 = sld [smem:[#allocation21_spill]]  ;;  %p1578_p4 = pnand %p966_p7, %p86_p0 }
  0x4a   : > { %s166_s23 = scalar_lea.sflag [#allocation7], %s165_s5  ;;  %s1160_s26 = scalar_lea.vmem %s179_s18, 1024 }
  0x4b   : > { %p1149_p12 = pneg %p1578_p4  ;;  %p1161_p2 = scmp.ne.s32.totalorder %s179_s18, %s1160_s26 }
  0x4c   : > { %s1345_s7 = smov [#allocation6]  }
  0x4d   : > { %p1163_p5 = pnand %p1161_p2, %p1149_p12  ;;  %s1165_s3 = sshll.u32 %s1345_s7, 4  ;;  %s1166_s3 = int_to_ptr.vmem [resolvable:$false] %s1165_s3 }
  0x4e   : > { %s1167_s27 = scalar_lea.vmem %s1166_s3, 2048  ;;  %p1168_p11 = scmp.lt.s32.totalorder %s179_s18, %s1166_s3 }
  0x4f   : > { %s177_s12 = scalar_lea.hbm %s1768_s1, %s774_s2  ;;  %p1164_p8 = pneg %p1163_p5 }
  0x50   : > { %p1169_p9 = scmp.lt.s32.totalorder %s1167_s27, %s1160_s26 }
  0x52   : > { %p1170_p1 = por %p1169_p9, %p1168_p11 }
  0x54   : > { %p1171_p3 = pnand %p1170_p1, %p1164_p8 }
  0x56   : > { %1174 = shalt.err (!%p1171_p3)
}
  0x57   : > { %s1770_s6 = smov 4   ;;  %s1771_s2 = smov 64  }
  0x58   : > { %s1772_s5 = smov 256   ;;  %190 = sbr.rel (%p1506_p10) target bundleno = 402 (0x192), region = 28 }
  0x59   : > { %961 = dma.hbm_to_vmem [thread:$0]  (!%p1578_p4), %s177_s12, 1024, %s179_s18, %s166_s23, %s1772_s5, %s1771_s2, %s1770_s6  }
  0x5a   : > { %s192_s28 = sand.u32 (!%p1506_p10), 1, %s1307_s16  }
  0x5b   : > { %s776_s19 = sshll.u32 (!%p1506_p10), %s192_s28, 6  ;;  %s193_s7 = scalar_lea.sflag (!%p1506_p10), [#allocation4], %s192_s28 }
  0x5c   : > { %s1592_s1 = scalar_lea.vmem (!%p1506_p10), [#allocation3], %s776_s19 }
  0x5d   : > { %1266 = dma.done.wait (%p1474_p6), %s193_s7, 1024  }
  0x5e   : > { %1268 = vsyncadd (%p1474_p6), %s193_s7, 4294966272  ;;  %s201_s26 = sand.u32 1, %s1295_s13  }
  0x5f   : > { %s777_s29 = sshll.u32 %s201_s26, 6  ;;  %s202_s23 = scalar_lea.sflag [#allocation7], %s201_s26 }
  0x60   : > { %s1599_s18 = scalar_lea.vmem [#allocation6], %s777_s29 }
  0x61   : > { %1270 = dma.done.wait (%p1522_p13), %s202_s23, 1024  }
  0x62   : > { %1272 = vsyncadd (%p1522_p13), %s202_s23, 4294966272  ;;  %s228_s15 = sand.u32 1, %s1283_s10   ;;  %s1773_s4 = sld [smem:[#allocation12_spill]] }
  0x63   : > { %s778_s12 = sshll.u32 %s228_s15, 6 }
  0x64   : > { %s1608_s3 = scalar_lea.vmem [#allocation8], %s778_s12 }
  0x68   : > { %p779_p6 = scmp.ne.s32.totalorder %s1773_s4, 0 }
  0x6a   : > { %238 = sbr.rel (%p779_p6) target bundleno = 120 (0x78), region = 40 }
  0x6f   : > { %v1346_v0 = vmov 0.0  }
  0x70   : > { %239 = vst [vmem:[#allocation2 + $0x30] sm:$0xff] %v1346_v0  ;;  %240 = vst [vmem:[#allocation2] sm:$0xff] %v1346_v0 }
  0x71   : > { %241 = vst [vmem:[#allocation2 + $0x58] sm:$0xff] %v1346_v0  ;;  %242 = vst [vmem:[#allocation2 + $0x18] sm:$0xff] %v1346_v0 }
  0x72   : > { %243 = vst [vmem:[#allocation2 + $0x50] sm:$0xff] %v1346_v0  ;;  %244 = vst [vmem:[#allocation2 + $0x68] sm:$0xff] %v1346_v0 }
  0x73   : > { %245 = vst [vmem:[#allocation2 + $0x8] sm:$0xff] %v1346_v0  ;;  %246 = vst [vmem:[#allocation2 + $0x48] sm:$0xff] %v1346_v0 }
  0x74   : > { %247 = vst [vmem:[#allocation2 + $0x40] sm:$0xff] %v1346_v0  ;;  %248 = vst [vmem:[#allocation2 + $0x20] sm:$0xff] %v1346_v0 }
  0x75   : > { %249 = vst [vmem:[#allocation2 + $0x10] sm:$0xff] %v1346_v0  ;;  %250 = vst [vmem:[#allocation2 + $0x38] sm:$0xff] %v1346_v0 }
  0x76   : > { %251 = vst [vmem:[#allocation2 + $0x60] sm:$0xff] %v1346_v0  ;;  %252 = vst [vmem:[#allocation2 + $0x70] sm:$0xff] %v1346_v0 }
  0x77   : > { %253 = vst [vmem:[#allocation2 + $0x78] sm:$0xff] %v1346_v0  ;;  %254 = vst [vmem:[#allocation2 + $0x28] sm:$0xff] %v1346_v0 }
  0x78 PF: > { %v1103_v1 = vld [vmem:[%s1599_s18 + $0x38] sm:$0xff]   ;;  %v1104_v2 = vld [vmem:[%s1599_s18 + $0x30] sm:$0xff]   ;;  %v1105_v3 = vld [vmem:[%s1599_s18 + $0x28] sm:$0xff]  }
  0x79   : > { %901 = vmatprep.subr.bf16.mxu0 %v1103_v1  ;;  %933 = vmatprep.subr.bf16.mxu1 %v1103_v1  ;;  %v1106_v4 = vld [vmem:[%s1599_s18 + $0x20] sm:$0xff]   ;;  %v1107_v7 = vld [vmem:[%s1599_s18 + $0x18] sm:$0xff]   ;;  %v1108_v8 = vld [vmem:[%s1599_s18 + $0x10] sm:$0xff]  }
  0x7a   : > { %902 = vmatpush3.bf16.msra.mxu0 %v1103_v1  ;;  %941 = vmatpush3.bf16.msra.mxu1 %v1103_v1  ;;  %v1111_v5 = vld [vmem:[%s1592_s1] sm:$0xff]   ;;  %v1109_v9 = vld [vmem:[%s1599_s18 + $0x8] sm:$0xff]   ;;  %v1115_v13 = vld [vmem:[%s1592_s1 + $0x10] sm:$0xff]  }
  0x7b   : > { %903 = vmatprep.subr.bf16.mxu0 %v1104_v2  ;;  %934 = vmatprep.subr.bf16.mxu1 %v1104_v2  ;;  %v1112_v6 = vld [vmem:[%s1592_s1 + $0x20] sm:$0xff]   ;;  %v1113_v11 = vld [vmem:[%s1592_s1 + $0x8] sm:$0xff]   ;;  %v1116_v14 = vld [vmem:[%s1592_s1 + $0x30] sm:$0xff]  }
  0x7c   : > { %917 = vmatprep.mubr.bf16.mxu0 %v1111_v5  ;;  %925 = vmatprep.mubr.bf16.mxu1 %v1112_v6  ;;  %v1110_v10 = vld [vmem:[%s1599_s18] sm:$0xff]   ;;  %v1114_v12 = vld [vmem:[%s1592_s1 + $0x28] sm:$0xff]   ;;  %v1117_v15 = vld [vmem:[%s1592_s1 + $0x18] sm:$0xff]  }
  0x7d   : > { %v1118_v16 = vld [vmem:[%s1592_s1 + $0x38] sm:$0xff]   ;;  %v265_v18 = vld [vmem:[#allocation2 + $0x10] sm:$0xff]  ;;  %v263_v22 = vld [vmem:[#allocation2 + $0x40] sm:$0xff]  ;;  %s1774_s1 = sld [smem:[#allocation12_spill]] }
  0x7e   : > { %904 = vmatpush3.bf16.msra.mxu0 %v1104_v2  ;;  %942 = vmatpush3.bf16.msra.mxu1 %v1104_v2  ;;  %v257_v17 = vld [vmem:[#allocation2 + $0x58] sm:$0xff]  ;;  %v255_v21 = vld [vmem:[#allocation2 + $0x30] sm:$0xff]  ;;  %v256_v33 = vld [vmem:[#allocation2] sm:$0xff] }
  0x7f   : > { %905 = vmatprep.subr.bf16.mxu0 %v1105_v3  ;;  %935 = vmatprep.subr.bf16.mxu1 %v1105_v3  ;;  %v258_v27 = vld [vmem:[#allocation2 + $0x18] sm:$0xff]  ;;  %v264_v34 = vld [vmem:[#allocation2 + $0x20] sm:$0xff]  ;;  %v261_v39 = vld [vmem:[#allocation2 + $0x8] sm:$0xff] }
  0x80   : > { %v266_v28 = vld [vmem:[#allocation2 + $0x38] sm:$0xff]  ;;  %v259_v45 = vld [vmem:[#allocation2 + $0x50] sm:$0xff]  ;;  %v267_v46 = vld [vmem:[#allocation2 + $0x60] sm:$0xff] }
  0x81   : > { %v269_v40 = vld [vmem:[#allocation2 + $0x78] sm:$0xff]  ;;  %v262_v51 = vld [vmem:[#allocation2 + $0x48] sm:$0xff]  ;;  %v268_v58 = vld [vmem:[#allocation2 + $0x70] sm:$0xff] }
  0x82   : > { %906 = vmatpush3.bf16.msra.mxu0 %v1105_v3  ;;  %943 = vmatpush3.bf16.msra.mxu1 %v1105_v3  ;;  %v270_v52 = vld [vmem:[#allocation2 + $0x28] sm:$0xff] }
  0x83   : > { %907 = vmatprep.subr.bf16.mxu0 %v1106_v4  ;;  %936 = vmatprep.subr.bf16.mxu1 %v1106_v4  ;;  %v260_v57 = vld [vmem:[#allocation2 + $0x68] sm:$0xff]  ;;  %p796_p7 = scmp.ne.s32.totalorder %s1774_s1, 3 }
  0x86   : > { %908 = vmatpush3.bf16.msra.mxu0 %v1106_v4  ;;  %944 = vmatpush3.bf16.msra.mxu1 %v1106_v4 }
  0x87   : > { %909 = vmatprep.subr.bf16.mxu0 %v1107_v7  ;;  %937 = vmatprep.subr.bf16.mxu1 %v1107_v7 }
  0x8a   : > { %910 = vmatpush3.bf16.msra.mxu0 %v1107_v7  ;;  %945 = vmatpush3.bf16.msra.mxu1 %v1107_v7 }
  0x8b   : > { %911 = vmatprep.subr.bf16.mxu0 %v1108_v8  ;;  %938 = vmatprep.subr.bf16.mxu1 %v1108_v8 }
  0x8e   : > { %912 = vmatpush3.bf16.msra.mxu0 %v1108_v8  ;;  %946 = vmatpush3.bf16.msra.mxu1 %v1108_v8 }
  0x8f   : > { %913 = vmatprep.subr.bf16.mxu0 %v1109_v9  ;;  %939 = vmatprep.subr.bf16.mxu1 %v1109_v9 }
  0x92   : > { %914 = vmatpush3.bf16.msra.mxu0 %v1109_v9  ;;  %947 = vmatpush3.bf16.msra.mxu1 %v1109_v9 }
  0x93   : > { %915 = vmatprep.subr.bf16.mxu0 %v1110_v10  ;;  %940 = vmatprep.subr.bf16.mxu1 %v1110_v10 }
  0x96   : > { %916 = vmatpush3.bf16.msra.mxu0 %v1110_v10  ;;  %948 = vmatpush3.bf16.msra.mxu1 %v1110_v10 }
  0x99   : > { %918 = vmatmul.mubr.bf16.vlgmr.msra.gmra.mxu0 %v1113_v11  ;;  %926 = vmatmul.mubr.bf16.vlgmr.msra.gmra.mxu1 %v1114_v12 }
  0x9a   : > { %921 = vmatprep.mubr.bf16.mxu0 %v1115_v13  ;;  %929 = vmatprep.mubr.bf16.mxu1 %v1116_v14 }
  0xa1   : > { %922 = vmatmul.mubr.bf16.gmra.mxu0 %v1117_v15  ;;  %930 = vmatmul.mubr.bf16.gmra.mxu1 %v1118_v16 }
 0x159   : > { %v919_v19 = vpop.f32.mrf.mxu0  ;;  %v927_v20 = vpop.f32.mrf.mxu1 }
 0x15a   : > { %v498_v23 = vadd.f32 %v919_v19, %v257_v17  ;;  %v506_v24 = vadd.f32 %v927_v20, %v265_v18 }
 0x15b   : > { %v433_v25 = vpop.f32.mrf.mxu0  ;;  %v465_v26 = vpop.f32.mrf.mxu1 }
 0x15c   : > { %514 = vst [vmem:[#allocation2 + $0x58] sm:$0xff] %v498_v23  ;;  %522 = vst [vmem:[#allocation2 + $0x10] sm:$0xff] %v506_v24  ;;  %v496_v29 = vadd.f32 %v433_v25, %v255_v21  ;;  %v504_v30 = vadd.f32 %v465_v26, %v263_v22 }
 0x15d   : > { %v920_v31 = vpop.f32.mrf.mxu0  ;;  %v928_v32 = vpop.f32.mrf.mxu1 }
 0x15e   : > { %512 = vst [vmem:[#allocation2 + $0x30] sm:$0xff] %v496_v29  ;;  %520 = vst [vmem:[#allocation2 + $0x40] sm:$0xff] %v504_v30  ;;  %v499_v35 = vadd.f32 %v920_v31, %v258_v27  ;;  %v507_v36 = vadd.f32 %v928_v32, %v266_v28 }
 0x15f   : > { %v436_v37 = vpop.f32.mrf.mxu0  ;;  %v468_v38 = vpop.f32.mrf.mxu1 }
 0x160   : > { %515 = vst [vmem:[#allocation2 + $0x18] sm:$0xff] %v499_v35  ;;  %523 = vst [vmem:[#allocation2 + $0x38] sm:$0xff] %v507_v36  ;;  %v497_v41 = vadd.f32 %v436_v37, %v256_v33  ;;  %v505_v42 = vadd.f32 %v468_v38, %v264_v34 }
 0x161   : > { %v923_v43 = vpop.f32.mrf.mxu0  ;;  %v931_v44 = vpop.f32.mrf.mxu1 }
 0x162   : > { %513 = vst [vmem:[#allocation2] sm:$0xff] %v497_v41  ;;  %521 = vst [vmem:[#allocation2 + $0x20] sm:$0xff] %v505_v42  ;;  %v502_v47 = vadd.f32 %v923_v43, %v261_v39  ;;  %v510_v48 = vadd.f32 %v931_v44, %v269_v40 }
 0x163   : > { %v449_v49 = vpop.f32.mrf.mxu0  ;;  %v481_v50 = vpop.f32.mrf.mxu1 }
 0x164   : > { %518 = vst [vmem:[#allocation2 + $0x8] sm:$0xff] %v502_v47  ;;  %526 = vst [vmem:[#allocation2 + $0x78] sm:$0xff] %v510_v48  ;;  %v500_v53 = vadd.f32 %v449_v49, %v259_v45  ;;  %v508_v54 = vadd.f32 %v481_v50, %v267_v46 }
 0x165   : > { %v924_v55 = vpop.f32.mrf.mxu0  ;;  %v932_v56 = vpop.f32.mrf.mxu1 }
 0x166   : > { %516 = vst [vmem:[#allocation2 + $0x50] sm:$0xff] %v500_v53  ;;  %524 = vst [vmem:[#allocation2 + $0x60] sm:$0xff] %v508_v54  ;;  %v503_v59 = vadd.f32 %v924_v55, %v262_v51  ;;  %v511_v60 = vadd.f32 %v932_v56, %v270_v52  ;;  %531 = sbr.rel (%p796_p7) target bundleno = 373 (0x175), region = 44 }
 0x167   : > { %v452_v61 = vpop.f32.mrf.mxu0  ;;  %v484_v62 = vpop.f32.mrf.mxu1 }
 0x168   : > { %519 = vst [vmem:[#allocation2 + $0x48] sm:$0xff] %v503_v59  ;;  %527 = vst [vmem:[#allocation2 + $0x28] sm:$0xff] %v511_v60  ;;  %v501_v63 = vadd.f32 %v452_v61, %v260_v57  ;;  %v509_v0 = vadd.f32 %v484_v62, %v268_v58 }
 0x16a   : > { %517 = vst [vmem:[#allocation2 + $0x68] sm:$0xff] %v501_v63  ;;  %525 = vst [vmem:[#allocation2 + $0x70] sm:$0xff] %v509_v0 }
 0x16b   : > { %v532_v1 = vld [vmem:[#allocation2 + $0x30] sm:$0xff]  ;;  %v533_v2 = vld [vmem:[#allocation2] sm:$0xff]  ;;  %v534_v3 = vld [vmem:[#allocation2 + $0x58] sm:$0xff] }
 0x16c   : > { %v841_v4 = vpack.c.bf16 %v533_v2, %v532_v1  ;;  %v535_v5 = vld [vmem:[#allocation2 + $0x18] sm:$0xff]  ;;  %v538_v10 = vld [vmem:[#allocation2 + $0x8] sm:$0xff]  ;;  %v540_v12 = vld [vmem:[#allocation2 + $0x40] sm:$0xff] }
 0x16d   : > { %v536_v6 = vld [vmem:[#allocation2 + $0x50] sm:$0xff]  ;;  %v846_v8 = vpack.c.bf16 %v535_v5, %v534_v3  ;;  %v541_v14 = vld [vmem:[#allocation2 + $0x20] sm:$0xff]  ;;  %v543_v16 = vld [vmem:[#allocation2 + $0x38] sm:$0xff] }
 0x16e   : > { %842 = vst [vmem:[%s1608_s3] sm:$0xff] %v841_v4   ;;  %v542_v15 = vld [vmem:[#allocation2 + $0x10] sm:$0xff]  ;;  %v861_v17 = vpack.c.bf16 %v541_v14, %v540_v12  ;;  %v544_v19 = vld [vmem:[#allocation2 + $0x60] sm:$0xff]  ;;  %v546_v21 = vld [vmem:[#allocation2 + $0x78] sm:$0xff] }
 0x16f   : > { %v539_v11 = vld [vmem:[#allocation2 + $0x48] sm:$0xff]  ;;  %878 = vst [vmem:[%s1608_s3 + $0x8] sm:$0xff] %v846_v8   ;;  %v866_v18 = vpack.c.bf16 %v543_v16, %v542_v15 }
 0x170   : > { %v856_v13 = vpack.c.bf16 %v539_v11, %v538_v10  ;;  %v547_v23 = vld [vmem:[#allocation2 + $0x28] sm:$0xff]  ;;  %881 = vst [vmem:[%s1608_s3 + $0x20] sm:$0xff] %v861_v17  }
 0x171   : > { %v537_v7 = vld [vmem:[#allocation2 + $0x68] sm:$0xff]  ;;  %v545_v20 = vld [vmem:[#allocation2 + $0x70] sm:$0xff]  ;;  %882 = vst [vmem:[%s1608_s3 + $0x28] sm:$0xff] %v866_v18   ;;  %v876_v24 = vpack.c.bf16 %v547_v23, %v546_v21 }
 0x172   : > { %v851_v9 = vpack.c.bf16 %v537_v7, %v536_v6  ;;  %880 = vst [vmem:[%s1608_s3 + $0x18] sm:$0xff] %v856_v13   ;;  %v871_v22 = vpack.c.bf16 %v545_v20, %v544_v19 }
 0x173   : > { %884 = vst [vmem:[%s1608_s3 + $0x38] sm:$0xff] %v876_v24  }
 0x174   : > { %879 = vst [vmem:[%s1608_s3 + $0x10] sm:$0xff] %v851_v9   ;;  %883 = vst [vmem:[%s1608_s3 + $0x30] sm:$0xff] %v871_v22  }
 0x175 PF: > { %s1775_s25 = sld [smem:[#allocation14_spill]]  ;;  %s644_s5 = sshll.u32 %s1608_s3, 4  ;;  %s1639_s5 = int_to_ptr.vmem [resolvable:$true] %s644_s5 }
 0x176   : > { %s1776_s27 = sld [smem:[#allocation13_spill]]  ;;  %s1648_s23 = scalar_lea.sflag [#allocation5], %s228_s15 }
 0x177   : > { %s1777_s26 = sld [smem:[#allocation22_spill]]  ;;  %s1175_s18 = scalar_lea.vmem %s1639_s5, 1024 }
 0x178   : > { %p1176_p10 = scmp.ne.s32.totalorder %s1639_s5, %s1175_s18  ;;  %p1778_p13 = scmp.ne.s32.totalorder %s1762_s30, 0 }
 0x179   : > { %s1347_s12 = smov [#allocation8]  }
 0x17a   : > { %p1177_p3 = pnand %p1176_p10, %p1778_p13  ;;  %s1179_s3 = sshll.u32 %s1347_s12, 4  ;;  %s1180_s3 = int_to_ptr.vmem [resolvable:$false] %s1179_s3 }
 0x17b   : > { %s837_s6 = sshll.u32 %s1775_s25, 6  ;;  %s1181_s4 = scalar_lea.vmem %s1180_s3, 2048 }
 0x17c   : > { %s641_s2 = sadd.s32 %s1776_s27, %s837_s6  ;;  %p1178_p0 = pneg %p1177_p3 }
 0x17d   : > { %s816_s28 = sshll.u32 %s641_s2, 6  ;;  %p1182_p1 = scmp.lt.s32.totalorder %s1639_s5, %s1180_s3 }
 0x17e   : > { %s1644_s29 = scalar_lea.hbm %s1777_s26, %s816_s28  ;;  %p1183_p4 = scmp.lt.s32.totalorder %s1181_s4, %s1175_s18 }
 0x180   : > { %p1184_p12 = por %p1183_p4, %p1182_p1 }
 0x182   : > { %p1185_p2 = pnand %p1184_p12, %p1178_p0 }
 0x184   : > { %1188 = shalt.err (!%p1185_p2)
}
 0x185   : > { %s1189_s15 = scalar_lea.hbm %s1644_s29, 1024  ;;  %s1193_s27 = scalar_lea.hbm %s1777_s26, 8192 }
 0x186   : > { %p1190_p5 = scmp.ne.s32.totalorder %s1644_s29, %s1189_s15  ;;  %p1194_p9 = scmp.lt.s32.totalorder %s1644_s29, %s1777_s26 }
 0x187   : > { %p1195_p6 = scmp.lt.s32.totalorder %s1193_s27, %s1189_s15 }
 0x188   : > { %p1191_p8 = pnand %p1190_p5, %p1778_p13 }
 0x189   : > { %p1196_p7 = por %p1195_p6, %p1194_p9 }
 0x18a   : > { %p1192_p11 = pneg %p1191_p8 }
 0x18c   : > { %p1197_p10 = pnand %p1196_p7, %p1192_p11 }
 0x18e   : > { %1200 = shalt.err (!%p1197_p10)
}
 0x18f   : > { %s1348_s28 = smov 64   ;;  %s1349_s19 = smov 256  }
 0x190   : > { %s1350_s7 = smov 4  }
 0x191   : > { %953 = dma.vmem_to_hbm [thread:$0]  (%p1778_p13), %s1639_s5, 1024, %s1644_s29, %s1648_s23, %s1348_s28, %s1349_s19, %s1350_s7  }
 0x192 PF: > { %p967_p3 = scmp.ge.s32.totalorder %s1339_s24, 2  ;;  %s659_s18 = sand.u32 1, %s1279_s9  }
 0x193   : > { %p1779_p0 = scmp.ne.s32.totalorder %s1767_s20, 0  ;;  %s660_s12 = scalar_lea.sflag [#allocation5], %s659_s18 }
 0x195   : > { %p963_p1 = pnand %p967_p3, %p1779_p0 }
 0x197   : > { %p964_p4 = pneg %p963_p1 }
 0x199   : > { %1274 = dma.done.wait (%p964_p4), %s660_s12, 1024  }
 0x19a   : > { %1276 = vsyncadd (%p964_p4), %s660_s12, 4294966272  ;;  %s21_s24 = sadd.s32 1, %s1339_s24   ;;  %s1781_s30 = sld [smem:[#allocation19_spill]] }
 0x19b   : > { %p1676_p12 = scmp.ge.s32.totalorder %s21_s24, 34   ;;  %s1782_s20 = sld [smem:[#allocation15_spill]] }
 0x19c   : > { %s1783_s5 = sld [smem:[#allocation16_spill]]  ;;  %s1786_s9 = smov %s1283_s10 }
 0x19d   : > { %s1784_s29 = sld [smem:[#allocation17_spill]]  ;;  %s1787_s10 = smov %s1287_s11 }
 0x19e   : > { %s1785_s23 = sld [smem:[#allocation18_spill]]  ;;  %s1788_s11 = smov %s1560_s0 }
 0x19f   : > { %s1789_s12 = smov %s1295_s13  ;;  %s1790_s13 = smov %s1299_s14 }
 0x1a0   : > { %s1791_s14 = smov %s1546_s8  ;;  %s1792_s15 = smov %s1307_s16 }
 0x1a1   : > { %s1793_s16 = smov %s1311_s17  ;;  %s1794_s17 = smov %s1781_s30 }
 0x1a2   : > { %s1795_s18 = smov %s1327_s21  ;;  %s1796_s19 = smov %s1331_s22 }
 0x1a3   : > { %s1797_s21 = smov %s1783_s5  ;;  %s1798_s22 = smov %s1784_s29 }
 0x1a4   :  { %20 = sbr.rel (!%p1676_p12) target bundleno = 17 (0x11), region = 94 }
 0x1a9   :  { %665 = vsyncpa [#allocation4], 1 }
 0x1aa   :  { %667 = vsyncpa [#allocation4 + $0x1], 1 }
 0x1ab   :  { %668 = vsyncpa [#allocation7], 1 }
 0x1ac   :  { %670 = vsyncpa [#allocation7 + $0x1], 1 }
 0x1ad   :  { %671 = vsyncpa [#allocation5], 1 }
 0x1ae   :  { %673 = vsyncpa [#allocation5 + $0x1], 1 }

</bundles_post_ra>
